<compile_context>
chip_gen: v7x
topology: tpu7x:2x2x1
jax: 0.10.0
libtpu: 0.0.40
codegen_flags: <defaults>
</compile_context>

<pallas_src>
import jax
import jax.numpy as jnp
from jax.experimental import pallas as pl
from jax.experimental.pallas import tpu as pltpu

LN_EPS = 1e-5          # PyTorch nn.LayerNorm default eps
LRELU_SLOPE = 0.2      # LeakyReLU(0.2)


def _ln_lrelu(h, gamma, beta):
    """LayerNorm over last dim followed by LeakyReLU(0.2)."""
    mean = jnp.mean(h, axis=-1, keepdims=True)
    var = jnp.mean((h - mean) * (h - mean), axis=-1, keepdims=True)
    hn = (h - mean) * jax.lax.rsqrt(var + LN_EPS)
    hn = hn * gamma + beta
    return jnp.where(hn > 0, hn, LRELU_SLOPE * hn)


def global_generator_kernel(
    x_ref,       # [TB, noise_dim+label_dim]  concat(noise, labels)
    dom_ref,     # [TB, C]    precomputed domain contribution to combined pre-act (incl. b_c)
    eps_ref,     # [TB, OUT]  reparameterization noise
    wb_ref,      # [NL, 2H]   block-diagonal fused noise|label branch weight
    wc_ref,      # [2H, C]    combined-proj weight rows for the two in-kernel branches
    wh_ref,      # [C, 2*OUT] fused [Wmu | Wlv]
    wo_ref,      # [OUT, OUT_PAD] lane-padded output projection
    vec_ref,     # [7, W]     packed bias/gamma/beta slab (see pack_params)
    out_ref,     # [TB, OUT_PAD]
):
    f32 = jnp.float32
    H = wc_ref.shape[0] // 2
    C = wc_ref.shape[1]
    OUT = wh_ref.shape[1] // 2
    OUT_PAD = wo_ref.shape[1]

    # packed vector slab rows (static ref slices -> free views)
    b_branch = vec_ref[0:1, 0:2 * H]
    g_branch = vec_ref[1:2, 0:2 * H]
    bt_branch = vec_ref[2:3, 0:2 * H]
    g_c = vec_ref[3:4, 0:C]
    bt_c = vec_ref[4:5, 0:C]
    b_heads = vec_ref[5:6, 0:2 * OUT]
    b_out = vec_ref[6:7, 0:OUT_PAD]

    # ---- fused noise|label branch: one MXU push against a block-diagonal weight ----
    branch_pre = jnp.dot(x_ref[...], wb_ref[...], preferred_element_type=f32) + b_branch
    nf = _ln_lrelu(branch_pre[:, 0:H], g_branch[:, 0:H], bt_branch[:, 0:H])
    lf = _ln_lrelu(branch_pre[:, H:2 * H], g_branch[:, H:2 * H], bt_branch[:, H:2 * H])

    # ---- combined projection (split-weight sum == concat matmul) ----
    # Domain branch contribution (including b_c) was precomputed per domain and
    # gathered in the wrapper; wc slices are taken on the Ref, not a loaded value.
    pre = (jnp.dot(nf, wc_ref[0:H, :], preferred_element_type=f32)
           + jnp.dot(lf, wc_ref[H:2 * H, :], preferred_element_type=f32)
           + dom_ref[...])
    processed = _ln_lrelu(pre, g_c, bt_c)

    # ---- fused mu|logvar heads + reparameterization ----
    heads = jnp.dot(processed, wh_ref[...], preferred_element_type=f32) + b_heads
    mu = heads[:, 0:OUT]
    logvar = heads[:, OUT:2 * OUT]
    z = mu + eps_ref[...] * jnp.exp(0.5 * logvar)

    # ---- lane-dense (padded to multiple of 128) output store ----
    out_ref[...] = (jnp.dot(z, wo_ref[...], preferred_element_type=f32)
                    + b_out).astype(out_ref.dtype)


def _ln_lrelu_jax(h, g, b):
    m = jnp.mean(h, axis=-1, keepdims=True)
    v = jnp.mean((h - m) ** 2, axis=-1, keepdims=True)
    hn = (h - m) * jax.lax.rsqrt(v + LN_EPS) * g + b
    return jnp.where(hn > 0, hn, LRELU_SLOPE * hn)


def pack_params(params):
    """One-time repacking of the module parameters into kernel-friendly form."""
    noise_dim, H = params["w_n"].shape
    label_dim = params["w_l"].shape[0]
    C = params["w_c"].shape[1]              # 2 * hidden_dim
    OUT = params["w_mu"].shape[1]           # output_dim
    OUT_PAD = ((OUT + 127) // 128) * 128    # lane-dense output width
    NL = noise_dim + label_dim

    # Hoisted domain branch: per-domain contribution to the combined pre-activation
    # (includes the combined-proj bias b_c), gathered per sample in the forward pass.
    df_table = _ln_lrelu_jax(params["emb"] @ params["w_d"] + params["b_d"],
                             params["g_d"], params["beta_d"])          # [num_domains, H]
    dom_table = df_table @ params["w_c"][2 * H:3 * H, :] + params["b_c"]  # [num_domains, C]

    # Block-diagonal fused noise|label branch weight.
    w_branch = jnp.zeros((NL, 2 * H), jnp.float32)
    w_branch = w_branch.at[:noise_dim, :H].set(params["w_n"])
    w_branch = w_branch.at[noise_dim:, H:].set(params["w_l"])

    wc12 = params["w_c"][:2 * H, :]                                    # [2H, C]
    w_heads = jnp.concatenate([params["w_mu"], params["w_lv"]], axis=1)  # [C, 2*OUT]
    w_out_pad = jnp.zeros((OUT, OUT_PAD), jnp.float32).at[:, :OUT].set(params["w_out"])

    # Pack the small per-feature vectors into a single VMEM slab (fewer input DMAs).
    W = max(2 * H, C, 2 * OUT, OUT_PAD)
    vecs = jnp.zeros((7, W), jnp.float32)
    vecs = vecs.at[0, :2 * H].set(jnp.concatenate([params["b_n"], params["b_l"]], axis=1)[0])
    vecs = vecs.at[1, :2 * H].set(jnp.concatenate([params["g_n"], params["g_l"]], axis=1)[0])
    vecs = vecs.at[2, :2 * H].set(jnp.concatenate([params["beta_n"], params["beta_l"]], axis=1)[0])
    vecs = vecs.at[3, :C].set(params["g_c"][0])
    vecs = vecs.at[4, :C].set(params["beta_c"][0])
    vecs = vecs.at[5, :2 * OUT].set(jnp.concatenate([params["b_mu"], params["b_lv"]], axis=1)[0])
    vecs = vecs.at[6, :OUT].set(params["b_out"][0])

    return dict(dom_table=dom_table, w_branch=w_branch, wc12=wc12,
                w_heads=w_heads, w_out_pad=w_out_pad, vecs=vecs,
                dims=dict(H=H, C=C, OUT=OUT, OUT_PAD=OUT_PAD, NL=NL))


def global_generator_forward(noise, labels, domain_indices, eps, packed):
    """Fused GlobalGenerator forward pass: one Pallas call over a batch grid."""
    B = noise.shape[0]
    d = packed["dims"]
    NL, C, OUT, OUT_PAD = d["NL"], d["C"], d["OUT"], d["OUT_PAD"]

    x_nl = jnp.concatenate([noise, labels], axis=1).astype(jnp.float32)
    dom_contrib = jnp.take(packed["dom_table"],
                           domain_indices.astype(jnp.int32), axis=0)      # [B, C]

    # Batch tiling: shards across the two v7x TensorCores for large B; single block
    # (no-op) at small B and on single-TC v5e/v6e.
    TB = B if B <= 512 else 512            # multiple of 8 (or full B)
    nb = pl.cdiv(B, TB)

    def row_spec(width):
        return pl.BlockSpec((TB, width), lambda i: (i, 0))

    def full_spec(arr):
        return pl.BlockSpec(arr.shape, lambda i: (0, 0))   # weights stay VMEM-resident

    out = pl.pallas_call(
        global_generator_kernel,
        out_shape=jax.ShapeDtypeStruct((B, OUT_PAD), jnp.float32),
        grid=(nb,),
        in_specs=[
            row_spec(NL),                      # x_nl
            row_spec(C),                       # dom_contrib
            row_spec(OUT),                     # eps
            full_spec(packed["w_branch"]),
            full_spec(packed["wc12"]),
            full_spec(packed["w_heads"]),
            full_spec(packed["w_out_pad"]),
            full_spec(packed["vecs"]),
        ],
        out_specs=pl.BlockSpec((TB, OUT_PAD), lambda i: (i, 0)),
        compiler_params=pltpu.CompilerParams(dimension_semantics=("parallel",)),
    )(x_nl, dom_contrib, eps,
      packed["w_branch"], packed["wc12"], packed["w_heads"],
      packed["w_out_pad"], packed["vecs"])

    return out[:, :OUT]    # drop lane padding


def init_params(key, noise_dim, label_dim, domain_dim, hidden_dim, output_dim,
                num_domains=3):
    """Deterministic synthetic parameter init (matches module __init__ shapes)."""
    keys = jax.random.split(key, 16)

    def lin(k, fan_in, fan_out, scale=0.1):
        kw, kb = jax.random.split(k)
        w = jax.random.normal(kw, (fan_in, fan_out), jnp.float32) * scale
        b = jax.random.normal(kb, (1, fan_out), jnp.float32) * scale
        return w, b

    def ln(dim):
        return jnp.ones((1, dim), jnp.float32), jnp.zeros((1, dim), jnp.float32)

    w_n, b_n = lin(keys[0], noise_dim, hidden_dim)
    g_n, beta_n = ln(hidden_dim)
    w_l, b_l = lin(keys[1], label_dim, hidden_dim)
    g_l, beta_l = ln(hidden_dim)
    w_d, b_d = lin(keys[2], domain_dim, hidden_dim)
    g_d, beta_d = ln(hidden_dim)
    w_c, b_c = lin(keys[3], 3 * hidden_dim, 2 * hidden_dim)
    g_c, beta_c = ln(2 * hidden_dim)
    w_mu, b_mu = lin(keys[4], 2 * hidden_dim, output_dim)
    w_lv, b_lv = lin(keys[5], 2 * hidden_dim, output_dim)
    w_out, b_out = lin(keys[6], output_dim, output_dim)
    emb = jax.random.normal(keys[7], (num_domains, domain_dim), jnp.float32)

    return dict(
        emb=emb,
        w_n=w_n, b_n=b_n, g_n=g_n, beta_n=beta_n,
        w_l=w_l, b_l=b_l, g_l=g_l, beta_l=beta_l,
        w_d=w_d, b_d=b_d, g_d=g_d, beta_d=beta_d,
        w_c=w_c, b_c=b_c, g_c=g_c, beta_c=beta_c,
        w_mu=w_mu, b_mu=b_mu, w_lv=w_lv, b_lv=b_lv,
        w_out=w_out, b_out=b_out,
    )


def reference_forward(noise, labels, domain_indices, eps, params):
    """Pure-JAX reference (mirrors the PyTorch module) for correctness checking."""
    def ln_lrelu(h, g, b):
        m = jnp.mean(h, axis=-1, keepdims=True)
        v = jnp.mean((h - m) ** 2, axis=-1, keepdims=True)
        hn = (h - m) / jnp.sqrt(v + LN_EPS) * g + b
        return jnp.where(hn > 0, hn, LRELU_SLOPE * hn)

    dom_emb = params["emb"][domain_indices]
    nf = ln_lrelu(noise @ params["w_n"] + params["b_n"], params["g_n"], params["beta_n"])
    lf = ln_lrelu(labels @ params["w_l"] + params["b_l"], params["g_l"], params["beta_l"])
    df = ln_lrelu(dom_emb @ params["w_d"] + params["b_d"], params["g_d"], params["beta_d"])
    combined = jnp.concatenate([nf, lf, df], axis=1)
    processed = ln_lrelu(combined @ params["w_c"] + params["b_c"],
                         params["g_c"], params["beta_c"])
    mu = processed @ params["w_mu"] + params["b_mu"]
    logvar = processed @ params["w_lv"] + params["b_lv"]
    z = mu + eps * jnp.exp(0.5 * logvar)
    return z @ params["w_out"] + params["b_out"]


if __name__ == "__main__":
    # Small shapes consistent with the module's forward.
    B = 8
    noise_dim, label_dim, domain_dim = 16, 10, 8
    hidden_dim, output_dim, num_domains = 32, 32, 3

    key = jax.random.PRNGKey(0)
    k_p, k_noise, k_labels, k_dom, k_eps = jax.random.split(key, 5)

    params = init_params(k_p, noise_dim, label_dim, domain_dim,
                         hidden_dim, output_dim, num_domains)
    packed = pack_params(params)

    noise = jax.random.normal(k_noise, (B, noise_dim), jnp.float32)
    labels = jax.random.normal(k_labels, (B, label_dim), jnp.float32)
    domain_indices = jax.random.randint(k_dom, (B,), 0, num_domains, jnp.int32)
    # eps for reparameterization (torch.randn_like equivalent), sampled in the wrapper
    # so the kernel is deterministic given its inputs.
    eps = jax.random.normal(k_eps, (B, output_dim), jnp.float32)

    out = global_generator_forward(noise, labels, domain_indices, eps, packed)
    out = jax.block_until_ready(out)

    ref = reference_forward(noise, labels, domain_indices, eps, params)
    assert out.shape == (B, output_dim)
    assert jnp.allclose(out, ref, atol=1e-4, rtol=1e-4), "mismatch vs JAX reference"

    print("KERNEL_OK")
</pallas_src>

<mosaic_0001>
module attributes {stable_mosaic.version = 11 : i64} {
  func.func @global_generator_kernel(%arg0: i32, %arg1: memref<8x26xf32, #tpu.memory_space<vmem>>, %arg2: memref<8x64xf32, #tpu.memory_space<vmem>>, %arg3: memref<8x32xf32, #tpu.memory_space<vmem>>, %arg4: memref<26x64xf32, #tpu.memory_space<vmem>>, %arg5: memref<64x64xf32, #tpu.memory_space<vmem>>, %arg6: memref<64x64xf32, #tpu.memory_space<vmem>>, %arg7: memref<32x128xf32, #tpu.memory_space<vmem>>, %arg8: memref<7x128xf32, #tpu.memory_space<vmem>>, %arg9: memref<8x128xf32, #tpu.memory_space<vmem>>) attributes {dimension_semantics = [#tpu.dimension_semantics<parallel>], iteration_bounds = array<i64: 1>, scalar_prefetch = 0 : i64, scratch_operands = 0 : i64, tpu.core_type = #tpu.core_type<tc>, window_params = [{transform_indices = @transform_0, window_bounds = array<i64: 8, 26>}, {transform_indices = @transform_1, window_bounds = array<i64: 8, 64>}, {transform_indices = @transform_2, window_bounds = array<i64: 8, 32>}, {pipeline_mode = #tpu.pipeline_mode<synchronous>, transform_indices = @transform_3, window_bounds = array<i64: 26, 64>}, {pipeline_mode = #tpu.pipeline_mode<synchronous>, transform_indices = @transform_4, window_bounds = array<i64: 64, 64>}, {pipeline_mode = #tpu.pipeline_mode<synchronous>, transform_indices = @transform_5, window_bounds = array<i64: 64, 64>}, {pipeline_mode = #tpu.pipeline_mode<synchronous>, transform_indices = @transform_6, window_bounds = array<i64: 32, 128>}, {pipeline_mode = #tpu.pipeline_mode<synchronous>, transform_indices = @transform_7, window_bounds = array<i64: 7, 128>}, {transform_indices = @transform_8, window_bounds = array<i64: 8, 128>}]} {
    %c0 = arith.constant 0 : index
    %c0_0 = arith.constant 0 : index
    %0 = vector.load %arg8[%c0, %c0_0] : memref<7x128xf32, #tpu.memory_space<vmem>>, vector<1x64xf32>
    %c1 = arith.constant 1 : index
    %c0_1 = arith.constant 0 : index
    %1 = vector.load %arg8[%c1, %c0_1] : memref<7x128xf32, #tpu.memory_space<vmem>>, vector<1x64xf32>
    %c2 = arith.constant 2 : index
    %c0_2 = arith.constant 0 : index
    %2 = vector.load %arg8[%c2, %c0_2] : memref<7x128xf32, #tpu.memory_space<vmem>>, vector<1x64xf32>
    %c3 = arith.constant 3 : index
    %c0_3 = arith.constant 0 : index
    %3 = vector.load %arg8[%c3, %c0_3] : memref<7x128xf32, #tpu.memory_space<vmem>>, vector<1x64xf32>
    %c4 = arith.constant 4 : index
    %c0_4 = arith.constant 0 : index
    %4 = vector.load %arg8[%c4, %c0_4] : memref<7x128xf32, #tpu.memory_space<vmem>>, vector<1x64xf32>
    %c5 = arith.constant 5 : index
    %c0_5 = arith.constant 0 : index
    %5 = vector.load %arg8[%c5, %c0_5] : memref<7x128xf32, #tpu.memory_space<vmem>>, vector<1x64xf32>
    %c6 = arith.constant 6 : index
    %c0_6 = arith.constant 0 : index
    %6 = vector.load %arg8[%c6, %c0_6] : memref<7x128xf32, #tpu.memory_space<vmem>>, vector<1x128xf32>
    %c0_7 = arith.constant 0 : index
    %c0_8 = arith.constant 0 : index
    %7 = vector.load %arg1[%c0_7, %c0_8] : memref<8x26xf32, #tpu.memory_space<vmem>>, vector<8x26xf32>
    %c0_9 = arith.constant 0 : index
    %c0_10 = arith.constant 0 : index
    %8 = vector.load %arg4[%c0_9, %c0_10] : memref<26x64xf32, #tpu.memory_space<vmem>>, vector<26x64xf32>
    %cst = arith.constant dense<0.000000e+00> : vector<8x64xf32>
    %9 = tpu.matmul %7, %8, %cst {dimension_numbers = #tpu.dot_dimension_numbers<[1], [0], [0], [1], [0, 0, 1, 1], [], []>} : vector<8x26xf32>, vector<26x64xf32>, vector<8x64xf32> -> vector<8x64xf32>
    %10 = vector.broadcast %0 : vector<1x64xf32> to vector<8x64xf32>
    %11 = arith.addf %9, %10 : vector<8x64xf32>
    %12 = vector.extract_strided_slice %11 {offsets = [0, 0], sizes = [8, 32], strides = [1, 1]} : vector<8x64xf32> to vector<8x32xf32>
    %13 = vector.extract_strided_slice %1 {offsets = [0, 0], sizes = [1, 32], strides = [1, 1]} : vector<1x64xf32> to vector<1x32xf32>
    %14 = vector.extract_strided_slice %2 {offsets = [0, 0], sizes = [1, 32], strides = [1, 1]} : vector<1x64xf32> to vector<1x32xf32>
    %cst_11 = arith.constant dense<0.000000e+00> : vector<8xf32>
    %15 = vector.multi_reduction <add>, %12, %cst_11 [1] : vector<8x32xf32> to vector<8xf32>
    %16 = vector.shape_cast %15 : vector<8xf32> to vector<8x1xf32>
    %cst_12 = arith.constant 3.200000e+01 : f32
    %17 = vector.broadcast %cst_12 : f32 to vector<8x1xf32>
    %18 = arith.divf %16, %17 : vector<8x1xf32>
    %19 = vector.broadcast %18 : vector<8x1xf32> to vector<8x32xf32>
    %20 = arith.subf %12, %19 : vector<8x32xf32>
    %21 = vector.broadcast %18 : vector<8x1xf32> to vector<8x32xf32>
    %22 = arith.subf %12, %21 : vector<8x32xf32>
    %23 = arith.mulf %20, %22 : vector<8x32xf32>
    %cst_13 = arith.constant dense<0.000000e+00> : vector<8xf32>
    %24 = vector.multi_reduction <add>, %23, %cst_13 [1] : vector<8x32xf32> to vector<8xf32>
    %25 = vector.shape_cast %24 : vector<8xf32> to vector<8x1xf32>
    %cst_14 = arith.constant 3.200000e+01 : f32
    %26 = vector.broadcast %cst_14 : f32 to vector<8x1xf32>
    %27 = arith.divf %25, %26 : vector<8x1xf32>
    %28 = vector.broadcast %18 : vector<8x1xf32> to vector<8x32xf32>
    %29 = arith.subf %12, %28 : vector<8x32xf32>
    %cst_15 = arith.constant 9.99999974E-6 : f32
    %30 = vector.broadcast %cst_15 : f32 to vector<8x1xf32>
    %31 = arith.addf %27, %30 : vector<8x1xf32>
    %32 = math.rsqrt %31 : vector<8x1xf32>
    %33 = vector.broadcast %32 : vector<8x1xf32> to vector<8x32xf32>
    %34 = arith.mulf %29, %33 : vector<8x32xf32>
    %35 = vector.broadcast %13 : vector<1x32xf32> to vector<8x32xf32>
    %36 = arith.mulf %34, %35 : vector<8x32xf32>
    %37 = vector.broadcast %14 : vector<1x32xf32> to vector<8x32xf32>
    %38 = arith.addf %36, %37 : vector<8x32xf32>
    %cst_16 = arith.constant 0.000000e+00 : f32
    %39 = vector.broadcast %cst_16 : f32 to vector<8x32xf32>
    %40 = arith.cmpf ogt, %38, %39 : vector<8x32xf32>
    %cst_17 = arith.constant 2.000000e-01 : f32
    %41 = vector.broadcast %cst_17 : f32 to vector<8x32xf32>
    %42 = arith.mulf %41, %38 : vector<8x32xf32>
    %43 = arith.select %40, %38, %42 : vector<8x32xi1>, vector<8x32xf32>
    %44 = vector.extract_strided_slice %11 {offsets = [0, 32], sizes = [8, 32], strides = [1, 1]} : vector<8x64xf32> to vector<8x32xf32>
    %45 = vector.extract_strided_slice %1 {offsets = [0, 32], sizes = [1, 32], strides = [1, 1]} : vector<1x64xf32> to vector<1x32xf32>
    %46 = vector.extract_strided_slice %2 {offsets = [0, 32], sizes = [1, 32], strides = [1, 1]} : vector<1x64xf32> to vector<1x32xf32>
    %cst_18 = arith.constant dense<0.000000e+00> : vector<8xf32>
    %47 = vector.multi_reduction <add>, %44, %cst_18 [1] : vector<8x32xf32> to vector<8xf32>
    %48 = vector.shape_cast %47 : vector<8xf32> to vector<8x1xf32>
    %cst_19 = arith.constant 3.200000e+01 : f32
    %49 = vector.broadcast %cst_19 : f32 to vector<8x1xf32>
    %50 = arith.divf %48, %49 : vector<8x1xf32>
    %51 = vector.broadcast %50 : vector<8x1xf32> to vector<8x32xf32>
    %52 = arith.subf %44, %51 : vector<8x32xf32>
    %53 = vector.broadcast %50 : vector<8x1xf32> to vector<8x32xf32>
    %54 = arith.subf %44, %53 : vector<8x32xf32>
    %55 = arith.mulf %52, %54 : vector<8x32xf32>
    %cst_20 = arith.constant dense<0.000000e+00> : vector<8xf32>
    %56 = vector.multi_reduction <add>, %55, %cst_20 [1] : vector<8x32xf32> to vector<8xf32>
    %57 = vector.shape_cast %56 : vector<8xf32> to vector<8x1xf32>
    %cst_21 = arith.constant 3.200000e+01 : f32
    %58 = vector.broadcast %cst_21 : f32 to vector<8x1xf32>
    %59 = arith.divf %57, %58 : vector<8x1xf32>
    %60 = vector.broadcast %50 : vector<8x1xf32> to vector<8x32xf32>
    %61 = arith.subf %44, %60 : vector<8x32xf32>
    %cst_22 = arith.constant 9.99999974E-6 : f32
    %62 = vector.broadcast %cst_22 : f32 to vector<8x1xf32>
    %63 = arith.addf %59, %62 : vector<8x1xf32>
    %64 = math.rsqrt %63 : vector<8x1xf32>
    %65 = vector.broadcast %64 : vector<8x1xf32> to vector<8x32xf32>
    %66 = arith.mulf %61, %65 : vector<8x32xf32>
    %67 = vector.broadcast %45 : vector<1x32xf32> to vector<8x32xf32>
    %68 = arith.mulf %66, %67 : vector<8x32xf32>
    %69 = vector.broadcast %46 : vector<1x32xf32> to vector<8x32xf32>
    %70 = arith.addf %68, %69 : vector<8x32xf32>
    %cst_23 = arith.constant 0.000000e+00 : f32
    %71 = vector.broadcast %cst_23 : f32 to vector<8x32xf32>
    %72 = arith.cmpf ogt, %70, %71 : vector<8x32xf32>
    %cst_24 = arith.constant 2.000000e-01 : f32
    %73 = vector.broadcast %cst_24 : f32 to vector<8x32xf32>
    %74 = arith.mulf %73, %70 : vector<8x32xf32>
    %75 = arith.select %72, %70, %74 : vector<8x32xi1>, vector<8x32xf32>
    %c0_25 = arith.constant 0 : index
    %c0_26 = arith.constant 0 : index
    %76 = vector.load %arg5[%c0_25, %c0_26] : memref<64x64xf32, #tpu.memory_space<vmem>>, vector<32x64xf32>
    %cst_27 = arith.constant dense<0.000000e+00> : vector<8x64xf32>
    %77 = tpu.matmul %43, %76, %cst_27 {dimension_numbers = #tpu.dot_dimension_numbers<[1], [0], [0], [1], [0, 0, 1, 1], [], []>} : vector<8x32xf32>, vector<32x64xf32>, vector<8x64xf32> -> vector<8x64xf32>
    %c32 = arith.constant 32 : index
    %c0_28 = arith.constant 0 : index
    %78 = vector.load %arg5[%c32, %c0_28] : memref<64x64xf32, #tpu.memory_space<vmem>>, vector<32x64xf32>
    %cst_29 = arith.constant dense<0.000000e+00> : vector<8x64xf32>
    %79 = tpu.matmul %75, %78, %cst_29 {dimension_numbers = #tpu.dot_dimension_numbers<[1], [0], [0], [1], [0, 0, 1, 1], [], []>} : vector<8x32xf32>, vector<32x64xf32>, vector<8x64xf32> -> vector<8x64xf32>
    %80 = arith.addf %77, %79 : vector<8x64xf32>
    %c0_30 = arith.constant 0 : index
    %c0_31 = arith.constant 0 : index
    %81 = vector.load %arg2[%c0_30, %c0_31] : memref<8x64xf32, #tpu.memory_space<vmem>>, vector<8x64xf32>
    %82 = arith.addf %80, %81 : vector<8x64xf32>
    %cst_32 = arith.constant dense<0.000000e+00> : vector<8xf32>
    %83 = vector.multi_reduction <add>, %82, %cst_32 [1] : vector<8x64xf32> to vector<8xf32>
    %84 = vector.shape_cast %83 : vector<8xf32> to vector<8x1xf32>
    %cst_33 = arith.constant 6.400000e+01 : f32
    %85 = vector.broadcast %cst_33 : f32 to vector<8x1xf32>
    %86 = arith.divf %84, %85 : vector<8x1xf32>
    %87 = vector.broadcast %86 : vector<8x1xf32> to vector<8x64xf32>
    %88 = arith.subf %82, %87 : vector<8x64xf32>
    %89 = vector.broadcast %86 : vector<8x1xf32> to vector<8x64xf32>
    %90 = arith.subf %82, %89 : vector<8x64xf32>
    %91 = arith.mulf %88, %90 : vector<8x64xf32>
    %cst_34 = arith.constant dense<0.000000e+00> : vector<8xf32>
    %92 = vector.multi_reduction <add>, %91, %cst_34 [1] : vector<8x64xf32> to vector<8xf32>
    %93 = vector.shape_cast %92 : vector<8xf32> to vector<8x1xf32>
    %cst_35 = arith.constant 6.400000e+01 : f32
    %94 = vector.broadcast %cst_35 : f32 to vector<8x1xf32>
    %95 = arith.divf %93, %94 : vector<8x1xf32>
    %96 = vector.broadcast %86 : vector<8x1xf32> to vector<8x64xf32>
    %97 = arith.subf %82, %96 : vector<8x64xf32>
    %cst_36 = arith.constant 9.99999974E-6 : f32
    %98 = vector.broadcast %cst_36 : f32 to vector<8x1xf32>
    %99 = arith.addf %95, %98 : vector<8x1xf32>
    %100 = math.rsqrt %99 : vector<8x1xf32>
    %101 = vector.broadcast %100 : vector<8x1xf32> to vector<8x64xf32>
    %102 = arith.mulf %97, %101 : vector<8x64xf32>
    %103 = vector.broadcast %3 : vector<1x64xf32> to vector<8x64xf32>
    %104 = arith.mulf %102, %103 : vector<8x64xf32>
    %105 = vector.broadcast %4 : vector<1x64xf32> to vector<8x64xf32>
    %106 = arith.addf %104, %105 : vector<8x64xf32>
    %cst_37 = arith.constant 0.000000e+00 : f32
    %107 = vector.broadcast %cst_37 : f32 to vector<8x64xf32>
    %108 = arith.cmpf ogt, %106, %107 : vector<8x64xf32>
    %cst_38 = arith.constant 2.000000e-01 : f32
    %109 = vector.broadcast %cst_38 : f32 to vector<8x64xf32>
    %110 = arith.mulf %109, %106 : vector<8x64xf32>
    %111 = arith.select %108, %106, %110 : vector<8x64xi1>, vector<8x64xf32>
    %c0_39 = arith.constant 0 : index
    %c0_40 = arith.constant 0 : index
    %112 = vector.load %arg6[%c0_39, %c0_40] : memref<64x64xf32, #tpu.memory_space<vmem>>, vector<64x64xf32>
    %cst_41 = arith.constant dense<0.000000e+00> : vector<8x64xf32>
    %113 = tpu.matmul %111, %112, %cst_41 {dimension_numbers = #tpu.dot_dimension_numbers<[1], [0], [0], [1], [0, 0, 1, 1], [], []>} : vector<8x64xf32>, vector<64x64xf32>, vector<8x64xf32> -> vector<8x64xf32>
    %114 = vector.broadcast %5 : vector<1x64xf32> to vector<8x64xf32>
    %115 = arith.addf %113, %114 : vector<8x64xf32>
    %116 = vector.extract_strided_slice %115 {offsets = [0, 0], sizes = [8, 32], strides = [1, 1]} : vector<8x64xf32> to vector<8x32xf32>
    %117 = vector.extract_strided_slice %115 {offsets = [0, 32], sizes = [8, 32], strides = [1, 1]} : vector<8x64xf32> to vector<8x32xf32>
    %c0_42 = arith.constant 0 : index
    %c0_43 = arith.constant 0 : index
    %118 = vector.load %arg3[%c0_42, %c0_43] : memref<8x32xf32, #tpu.memory_space<vmem>>, vector<8x32xf32>
    %cst_44 = arith.constant 5.000000e-01 : f32
    %119 = vector.broadcast %cst_44 : f32 to vector<8x32xf32>
    %120 = arith.mulf %119, %117 : vector<8x32xf32>
    %121 = math.exp %120 : vector<8x32xf32>
    %122 = arith.mulf %118, %121 : vector<8x32xf32>
    %123 = arith.addf %116, %122 : vector<8x32xf32>
    %c0_45 = arith.constant 0 : index
    %c0_46 = arith.constant 0 : index
    %124 = vector.load %arg7[%c0_45, %c0_46] : memref<32x128xf32, #tpu.memory_space<vmem>>, vector<32x128xf32>
    %cst_47 = arith.constant dense<0.000000e+00> : vector<8x128xf32>
    %125 = tpu.matmul %123, %124, %cst_47 {dimension_numbers = #tpu.dot_dimension_numbers<[1], [0], [0], [1], [0, 0, 1, 1], [], []>} : vector<8x32xf32>, vector<32x128xf32>, vector<8x128xf32> -> vector<8x128xf32>
    %126 = vector.broadcast %6 : vector<1x128xf32> to vector<8x128xf32>
    %127 = arith.addf %125, %126 : vector<8x128xf32>
    %c0_48 = arith.constant 0 : index
    %c0_49 = arith.constant 0 : index
    %128 = vector.load %arg9[%c0_48, %c0_49] : memref<8x128xf32, #tpu.memory_space<vmem>>, vector<8x128xf32>
    tpu.vector_store %arg9[%c0_48, %c0_49], %127 {strides = array<i32>} : memref<8x128xf32, #tpu.memory_space<vmem>>, vector<8x128xf32>,
    return
  }
  func.func @transform_0(%arg0: i32) -> (i32, i32) {
    %c0_i32 = arith.constant 0 : i32
    %c0_i32_0 = arith.constant 0 : i32
    return %arg0, %c0_i32 : i32, i32
  }
  func.func @transform_1(%arg0: i32) -> (i32, i32) {
    %c0_i32 = arith.constant 0 : i32
    %c0_i32_0 = arith.constant 0 : i32
    return %arg0, %c0_i32 : i32, i32
  }
  func.func @transform_2(%arg0: i32) -> (i32, i32) {
    %c0_i32 = arith.constant 0 : i32
    %c0_i32_0 = arith.constant 0 : i32
    return %arg0, %c0_i32 : i32, i32
  }
  func.func @transform_3(%arg0: i32) -> (i32, i32) {
    %c0_i32 = arith.constant 0 : i32
    %c0_i32_0 = arith.constant 0 : i32
    %c0_i32_1 = arith.constant 0 : i32
    return %c0_i32, %c0_i32_0 : i32, i32
  }
  func.func @transform_4(%arg0: i32) -> (i32, i32) {
    %c0_i32 = arith.constant 0 : i32
    %c0_i32_0 = arith.constant 0 : i32
    %c0_i32_1 = arith.constant 0 : i32
    return %c0_i32, %c0_i32_0 : i32, i32
  }
  func.func @transform_5(%arg0: i32) -> (i32, i32) {
    %c0_i32 = arith.constant 0 : i32
    %c0_i32_0 = arith.constant 0 : i32
    %c0_i32_1 = arith.constant 0 : i32
    return %c0_i32, %c0_i32_0 : i32, i32
  }
  func.func @transform_6(%arg0: i32) -> (i32, i32) {
    %c0_i32 = arith.constant 0 : i32
    %c0_i32_0 = arith.constant 0 : i32
    %c0_i32_1 = arith.constant 0 : i32
    return %c0_i32, %c0_i32_0 : i32, i32
  }
  func.func @transform_7(%arg0: i32) -> (i32, i32) {
    %c0_i32 = arith.constant 0 : i32
    %c0_i32_0 = arith.constant 0 : i32
    %c0_i32_1 = arith.constant 0 : i32
    return %c0_i32, %c0_i32_0 : i32, i32
  }
  func.func @transform_8(%arg0: i32) -> (i32, i32) {
    %c0_i32 = arith.constant 0 : i32
    %c0_i32_0 = arith.constant 0 : i32
    return %arg0, %c0_i32 : i32, i32
  }
}

</mosaic_0001>

<bundles_post_ra>
// kernel: tpu_custom_call.1
= control target key start
LH: loop header
LB: loop body
LE: loop exit
PB: predicated region body
PF: predicated region fallthrough
CT: control target
= control target key end

     0   :  { %13 = vsyncpa [#allocation3], 0  ;;  %s1238_s0 = inlined_call_operand.hbm [shape: f32[8,26], index: 0, kind: input, shape index: {}]   ;;  %s1239_s1 = inlined_call_operand.hbm [shape: f32[8,64], index: 1, kind: input, shape index: {}]   ;;  %s1240_s2 = inlined_call_operand.hbm [shape: f32[8,32], index: 2, kind: input, shape index: {}]   ;;  %s1241_s3 = inlined_call_operand.hbm [shape: f32[26,64], index: 3, kind: input, shape index: {}]   ;;  %s1242_s4 = inlined_call_operand.hbm [shape: f32[64,64], index: 4, kind: input, shape index: {}]   ;;  %s1243_s5 = inlined_call_operand.hbm [shape: f32[64,64], index: 5, kind: input, shape index: {}]   ;;  %s1244_s6 = inlined_call_operand.hbm [shape: f32[32,128], index: 6, kind: input, shape index: {}]   ;;  %s1245_s7 = inlined_call_operand.vmem [shape: f32[7,128], index: 7, kind: input, shape index: {}]   ;;  %s1246_s8 = inlined_call_operand.hbm [shape: f32[8,128], index: 8, kind: output, shape index: {}]  }
   0x1   :  { %14 = vsyncpa [#allocation6], 0 }
   0x2   :  { %15 = vsyncpa [#allocation9], 0 }
   0x3   :  { %16 = vsyncpa [#allocation12], 0 }
   0x4   :  { %17 = vsyncpa [#allocation4], 0  ;;  %s999_s27 = smov [#allocation5]   ;;  %s1000_s29 = smov [#allocation8]  }
   0x5   :  { %s34_s28 = sshll.u32 %s999_s27, 4  ;;  %s53_s30 = sshll.u32 %s1000_s29, 4  ;;  %s35_s28 = int_to_ptr.vmem [resolvable:$true] %s34_s28  ;;  %s1059_s30 = int_to_ptr.vmem [resolvable:$true] %s53_s30 }
   0x6   :  { %s813_s11 = scalar_lea.hbm %s1239_s1, 128 }
   0x7   :  { %p814_p0 = scmp.ne.s32.totalorder %s1239_s1, %s813_s11  ;;  %p817_p1 = scmp.lt.u32.totalorder %s813_s11, %s1239_s1 }
   0x9   :  { %p819_p2 = pnand %p817_p1, %p814_p0 }
   0xb   :  { %822 = shalt.err (!%p819_p2)
}
   0xc   :  { %s823_s16 = scalar_lea.vmem %s35_s28, 128  ;;  %p828_p4 = scmp.lt.s32.totalorder %s35_s28, %s35_s28 }
   0xd   :  { %p824_p3 = scmp.ne.s32.totalorder %s35_s28, %s823_s16  ;;  %p829_p5 = scmp.lt.s32.totalorder %s823_s16, %s823_s16 }
   0xf   :  { %p830_p6 = por %p829_p5, %p828_p4 }
  0x11   :  { %p831_p7 = pnand %p830_p6, %p824_p3 }
  0x13   :  { %834 = shalt.err (!%p831_p7)
}
  0x14   :  { %37 = dma.hbm_to_vmem [thread:$0]  %s1239_s1, 128, %s35_s28, [#allocation6]  }
  0x15   :  { %s835_s21 = scalar_lea.hbm %s1241_s3, 512 }
  0x16   :  { %p836_p8 = scmp.ne.s32.totalorder %s1241_s3, %s835_s21  ;;  %p839_p9 = scmp.lt.u32.totalorder %s835_s21, %s1241_s3 }
  0x18   :  { %p841_p10 = pnand %p839_p9, %p836_p8 }
  0x1a   :  { %844 = shalt.err (!%p841_p10)
}
  0x1b   :  { %s845_s26 = scalar_lea.vmem %s1059_s30, 512  ;;  %p850_p12 = scmp.lt.s32.totalorder %s1059_s30, %s1059_s30 }
  0x1c   :  { %p846_p11 = scmp.ne.s32.totalorder %s1059_s30, %s845_s26  ;;  %p851_p13 = scmp.lt.s32.totalorder %s845_s26, %s845_s26 }
  0x1e   :  { %p852_p0 = por %p851_p13, %p850_p12 }
  0x20   :  { %p853_p1 = pnand %p852_p0, %p846_p11 }
  0x22   :  { %856 = shalt.err (!%p853_p1)
}
  0x23   :  { %s1001_s1 = smov 128   ;;  %s1002_s27 = smov 8  }
  0x24   :  { %59 = dma.hbm_to_vmem [thread:$0]  %s1241_s3, 512, %s1059_s30, [#allocation9], %s1001_s1, %s1001_s1, %s1002_s27  }
  0x25   :  { %s1003_s9 = smov [#allocation11]   ;;  %s1004_s11 = smov [#allocation2]  }
  0x26   :  { %s77_s10 = sshll.u32 %s1003_s9, 4  ;;  %s24_s12 = sshll.u32 %s1004_s11, 4  ;;  %s78_s10 = int_to_ptr.vmem [resolvable:$true] %s77_s10  ;;  %s25_s12 = int_to_ptr.vmem [resolvable:$true] %s24_s12 }
  0x27   :  { %s857_s15 = scalar_lea.hbm %s1243_s5, 1024 }
  0x28   :  { %p858_p2 = scmp.ne.s32.totalorder %s1243_s5, %s857_s15  ;;  %p861_p3 = scmp.lt.u32.totalorder %s857_s15, %s1243_s5 }
  0x2a   :  { %p863_p4 = pnand %p861_p3, %p858_p2 }
  0x2c   :  { %866 = shalt.err (!%p863_p4)
}
  0x2d   :  { %s867_s3 = scalar_lea.vmem %s78_s10, 1024  ;;  %p872_p6 = scmp.lt.s32.totalorder %s78_s10, %s78_s10 }
  0x2e   :  { %p868_p5 = scmp.ne.s32.totalorder %s78_s10, %s867_s3  ;;  %p873_p7 = scmp.lt.s32.totalorder %s867_s3, %s867_s3 }
  0x30   :  { %p874_p8 = por %p873_p7, %p872_p6 }
  0x32   :  { %p875_p9 = pnand %p874_p8, %p868_p5 }
  0x34   :  { %878 = shalt.err (!%p875_p9)
}
  0x35   :  { %83 = dma.hbm_to_vmem [thread:$0]  %s1243_s5, 1024, %s78_s10, [#allocation12], %s1001_s1, %s1001_s1, %s1002_s27  }
  0x36   :  { %s879_s23 = scalar_lea.hbm %s1238_s0, 128 }
  0x37   :  { %p880_p10 = scmp.ne.s32.totalorder %s1238_s0, %s879_s23  ;;  %p883_p11 = scmp.lt.u32.totalorder %s879_s23, %s1238_s0 }
  0x39   :  { %p885_p12 = pnand %p883_p11, %p880_p10 }
  0x3b   :  { %888 = shalt.err (!%p885_p12)
}
  0x3c   :  { %s889_s29 = scalar_lea.vmem %s25_s12, 128  ;;  %p894_p0 = scmp.lt.s32.totalorder %s25_s12, %s25_s12 }
  0x3d   :  { %p890_p13 = scmp.ne.s32.totalorder %s25_s12, %s889_s29  ;;  %p895_p1 = scmp.lt.s32.totalorder %s889_s29, %s889_s29 }
  0x3f   :  { %p896_p2 = por %p895_p1, %p894_p0 }
  0x41   :  { %p897_p3 = pnand %p896_p2, %p890_p13 }
  0x43   :  { %900 = shalt.err (!%p897_p3)
}
  0x44   :  { %27 = dma.hbm_to_vmem [thread:$0]  %s1238_s0, 128, %s25_s12, [#allocation3]  }
  0x45   :  { %s1005_s10 = smov [#allocation7]   ;;  %s1006_s13 = smov [#allocation10]  }
  0x46   :  { %s44_s11 = sshll.u32 %s1005_s10, 4  ;;  %s65_s14 = sshll.u32 %s1006_s13, 4  ;;  %s45_s11 = int_to_ptr.vmem [resolvable:$true] %s44_s11  ;;  %s1120_s14 = int_to_ptr.vmem [resolvable:$true] %s65_s14 }
  0x47   :  { %s901_s17 = scalar_lea.hbm %s1240_s2, 128 }
  0x48   :  { %p902_p4 = scmp.ne.s32.totalorder %s1240_s2, %s901_s17  ;;  %p905_p5 = scmp.lt.u32.totalorder %s901_s17, %s1240_s2 }
  0x4a   :  { %p907_p6 = pnand %p905_p5, %p902_p4 }
  0x4c   :  { %910 = shalt.err (!%p907_p6)
}
  0x4d   :  { %s911_s0 = scalar_lea.vmem %s45_s11, 128  ;;  %p916_p8 = scmp.lt.s32.totalorder %s45_s11, %s45_s11 }
  0x4e   :  { %p912_p7 = scmp.ne.s32.totalorder %s45_s11, %s911_s0  ;;  %p917_p9 = scmp.lt.s32.totalorder %s911_s0, %s911_s0 }
  0x50   :  { %p918_p10 = por %p917_p9, %p916_p8 }
  0x52   :  { %p919_p11 = pnand %p918_p10, %p912_p7 }
  0x54   :  { %922 = shalt.err (!%p919_p11)
}
  0x55   :  { %47 = dma.hbm_to_vmem [thread:$0]  %s1240_s2, 128, %s45_s11, [#allocation6]  }
  0x56   :  { %s923_s23 = scalar_lea.hbm %s1242_s4, 1024 }
  0x57   :  { %p924_p12 = scmp.ne.s32.totalorder %s1242_s4, %s923_s23  ;;  %p927_p13 = scmp.lt.u32.totalorder %s923_s23, %s1242_s4 }
  0x59   :  { %p929_p0 = pnand %p927_p13, %p924_p12 }
  0x5b   :  { %932 = shalt.err (!%p929_p0)
}
  0x5c   :  { %s933_s29 = scalar_lea.vmem %s1120_s14, 1024  ;;  %p938_p2 = scmp.lt.s32.totalorder %s1120_s14, %s1120_s14 }
  0x5d   :  { %p934_p1 = scmp.ne.s32.totalorder %s1120_s14, %s933_s29  ;;  %p939_p3 = scmp.lt.s32.totalorder %s933_s29, %s933_s29 }
  0x5f   :  { %p940_p4 = por %p939_p3, %p938_p2 }
  0x61   :  { %p941_p5 = pnand %p940_p4, %p934_p1 }
  0x63   :  { %944 = shalt.err (!%p941_p5)
}
  0x64   :  { %71 = dma.hbm_to_vmem [thread:$0]  %s1242_s4, 1024, %s1120_s14, [#allocation9], %s1001_s1, %s1001_s1, %s1002_s27  }
  0x65   :  { %s1007_s9 = smov [#allocation13]   ;;  %s945_s15 = scalar_lea.hbm %s1244_s6, 512 }
  0x66   :  { %s89_s10 = sshll.u32 %s1007_s9, 4  ;;  %p946_p6 = scmp.ne.s32.totalorder %s1244_s6, %s945_s15  ;;  %s90_s10 = int_to_ptr.vmem [resolvable:$true] %s89_s10 }
  0x67   :  { %p949_p7 = scmp.lt.u32.totalorder %s945_s15, %s1244_s6 }
  0x69   :  { %p951_p8 = pnand %p949_p7, %p946_p6 }
  0x6b   :  { %954 = shalt.err (!%p951_p8)
}
  0x6c   :  { %s955_s3 = scalar_lea.vmem %s90_s10, 512  ;;  %p960_p10 = scmp.lt.s32.totalorder %s90_s10, %s90_s10 }
  0x6d   :  { %p956_p9 = scmp.ne.s32.totalorder %s90_s10, %s955_s3  ;;  %p961_p11 = scmp.lt.s32.totalorder %s955_s3, %s955_s3 }
  0x6f   :  { %p962_p12 = por %p961_p11, %p960_p10 }
  0x71   :  { %p963_p13 = pnand %p962_p12, %p956_p9 }
  0x73   :  { %966 = shalt.err (!%p963_p13)
}
  0x74   :  { %95 = dma.hbm_to_vmem [thread:$0]  %s1244_s6, 512, %s90_s10, [#allocation12], %s1001_s1, %s1001_s1, %s1002_s27  }
  0x75   :  { %989 = dma.done.wait [#allocation3], 128  }
  0x76   :  { %990 = vsyncadd [#allocation3], 4294967168 }
  0x77   :  { %991 = dma.done.wait [#allocation6], 256  }
  0x78   :  { %992 = vsyncadd [#allocation6], 4294967040 }
  0x79   :  { %993 = dma.done.wait [#allocation9], 1536  }
  0x7a   :  { %994 = vsyncadd [#allocation9], 4294965760 }
  0x7b   :  { %995 = dma.done.wait [#allocation12], 1536  }
  0x7c   :  { %996 = vsyncadd [#allocation12], 4294965760  ;;  %v1008_v0 = vmov 0.0|0.0   ;;  %vm1009_vm0 = vmmov 0   ;;  %v1010_v1 = vmov 0.0   ;;  %v127_v2 = vld [vmem:[#allocation8] sm:$0xff] }
  0x7d   :  { %753 = vmatprep.subr.bf16.mxu0 %v1008_v0  ;;  %760 = vmatprep.subr.bf16.mxu1 %v1008_v0  ;;  %v128_v3 = vld [vmem:[#allocation8 + $0x8] sm:$0xff]  ;;  %v129_v4 = vld [vmem:[#allocation8 + $0x10] sm:$0xff]  ;;  %v130_v6 = vld [vmem:[#allocation8 + $0x18] sm:$0x3]  ;;  %vm139_vm1 = vcmask 1041408   ;;  %vm1011_vm2 = vmmov 1  }
  0x7e   :  { %698 = vmatprep.mubr.msk.f32.mxu0 %vm1009_vm0, %v1010_v1  ;;  %709 = vmatprep.mubr.msk.f32.mxu1 %vm1009_vm0, %v1010_v1  ;;  %v754_v5 = vpack.c.bf16 %v128_v3, %v127_v2  ;;  %v757_v7 = vpack.c.bf16 %v130_v6, %v129_v4  ;;  %vm758_vm3 = vmpackc.low %vm139_vm1, %vm1011_vm2  ;;  %v126_v8 = vld [vmem:[#allocation2] sm:$0xff]  ;;  %vm135_vm4 = vcmask 211968   ;;  %s1012_s27 = smov 96   ;;  %vm213_vm5 = vcmask 261120   ;;  %v267_v27 = vld [vmem:[#allocation10] sm:$0xff]  ;;  %s1013_s2 = smov [#allocation14]  }
  0x7f   :  { %v648_v9 = vld [vmem:[%s1245_s7] ss:$0 sm:$0xff]  ;;  %v269_v30 = vld [vmem:[#allocation10 + $0x10] sm:$0xff]  ;;  %v270_v31 = vld [vmem:[#allocation10 + $0x18] sm:$0xff]  ;;  %vm425_vm8 = vcmask 523264   ;;  %s636_s5 = sshll.u32 %s1013_s2, 4  ;;  %s637_s5 = int_to_ptr.vmem [resolvable:$true] %s636_s5 }
  0x80   :  { %755 = vmatpush3.bf16.msra.mxu0 %v754_v5  ;;  %v268_v28 = vld [vmem:[#allocation10 + $0x8] sm:$0xff]  ;;  %v770_v32 = vpack.c.bf16 %v270_v31, %v269_v30  ;;  %v271_v33 = vld [vmem:[#allocation10 + $0x20] sm:$0xff]  ;;  %v273_v35 = vld [vmem:[#allocation10 + $0x30] sm:$0xff]  ;;  %s967_s9 = scalar_lea.vmem %s637_s5, 128  ;;  %p972_p1 = scmp.lt.s32.totalorder %s637_s5, %s637_s5 }
  0x81   :  { %756 = vmatprep.subr.bf16.mxu0 %v1008_v0  ;;  %v767_v29 = vpack.c.bf16 %v268_v28, %v267_v27  ;;  %v272_v34 = vld [vmem:[#allocation10 + $0x28] sm:$0xff]  ;;  %v274_v37 = vld [vmem:[#allocation10 + $0x38] sm:$0xff]  ;;  %v423_v63 = vld [vmem:[#allocation5] sm:$0xff]  ;;  %p968_p0 = scmp.ne.s32.totalorder %s637_s5, %s967_s9  ;;  %p973_p2 = scmp.lt.s32.totalorder %s967_s9, %s967_s9 }
  0x82   :  { %v761_v36 = vpack.c.bf16 %v272_v34, %v271_v33  ;;  %v764_v38 = vpack.c.bf16 %v274_v37, %v273_v35  ;;  %v651_v43 = vld [vmem:[%s1245_s7 + $0x1] ss:$0 sm:$0xff]  ;;  %v652_v45 = vld [vmem:[%s1245_s7 + $0x2] ss:$0 sm:$0xff]  ;;  %v656_v28 = vld [vmem:[%s1245_s7 + $0x4] ss:$0 sm:$0xff] }
  0x83   :  { %v548_v33 = vld [vmem:[#allocation13] sm:$0xff]  ;;  %v549_v34 = vld [vmem:[#allocation13 + $0x8] sm:$0xff]  ;;  %p974_p3 = por %p973_p2, %p972_p1 }
  0x84   :  { %759 = vmatpush3.bf16.msk.msra.mxu0 %vm758_vm3, %v757_v7  ;;  %762 = vmatpush3.bf16.msra.mxu1 %v761_v36  ;;  %v785_v35 = vpack.c.bf16 %v549_v34, %v548_v33  ;;  %v657_v36 = vld [vmem:[%s1245_s7 + $0x5] ss:$0 sm:$0xff] }
  0x85   :  { %766 = vmatprep.subr.bf16.mxu0 %v1008_v0  ;;  %763 = vmatprep.subr.bf16.mxu1 %v1008_v0  ;;  %p975_p4 = pnand %p974_p3, %p968_p0 }
  0x87   :  { %699 = vmatmul.mubr.msk.f32.vlgmr.msra.gmra.mrb[0].mxu0 %vm135_vm4, %v126_v8 }
  0x88   :  { %720 = vmatprep.mubr.msk.f32.mxu0 %vm1009_vm0, %v1010_v1  ;;  %768 = vmatpush3.bf16.msra.mxu0 %v767_v29 }
  0x89   :  { %769 = vmatprep.subr.bf16.mxu0 %v1008_v0  ;;  %765 = vmatpush3.bf16.msra.mxu1 %v764_v38 }
  0x8a   :  { %772 = vmatprep.subr.bf16.mxu1 %v1008_v0 }
  0x8c   :  { %771 = vmatpush3.bf16.msra.mxu0 %v770_v32 }
  0x8d   :  { %784 = vmatprep.subr.bf16.mxu0 %v1008_v0 }
 0x15a   :  { %v209_v10 = vpop.f32.mrb[0].mxu0 }
 0x15b   :  { %v210_v11 = vadd.f32 %v648_v9, %v209_v10  ;;  %v700_v12 = vpop.f32.mrb[1].mxu0 }
 0x15d   :  { %242 = vrot.lane.b32.xlu0 %v210_v11, %s1012_s27  ;;  %v214_v19 = vsel %vm213_vm5, %v210_v11, 0.0 }
 0x1cf   :  { %v243_v13 = vpop.permute.xlu0 %242 }
 0x1d0   :  { %v245_v14 = vsel %vm213_vm5, %v243_v13, 0.0  ;;  %v455_v13 = vld [vmem:[#allocation11 + $0x10] sm:$0xff] }
 0x1d1   :  { %246 = vadd.xlane.f32.xlu0 %v245_v14  ;;  %v456_v14 = vld [vmem:[#allocation11 + $0x18] sm:$0xff] }
 0x25e   :  { %v247_v15 = vpop.xlane.xlu0 %246 }
 0x25f   :  { %v248_v16 = vmul.f32 0.03125, %v247_v15  ;;  %v776_v15 = vpack.c.bf16 %v456_v14, %v455_v13 }
 0x261   :  { %v249_v17 = vsub.f32 %v210_v11, %v248_v16  ;;  %v457_v16 = vld [vmem:[#allocation11 + $0x20] sm:$0xff] }
 0x263   :  { %v250_v18 = vmul.f32 %v249_v17, %v249_v17 }
 0x265   :  { %252 = vrot.lane.b32.xlu1 %v250_v18, %s1012_s27 }
 0x289   :  { %215 = vadd.xlane.f32.xlu1 %v214_v19  ;;  %v459_v19 = vld [vmem:[#allocation11 + $0x30] sm:$0xff] }
 0x2d7   :  { %v253_v20 = vpop.permute.xlu1 %252 }
 0x2d8   :  { %v255_v21 = vsel %vm213_vm5, %v253_v20, 0.0  ;;  %v460_v20 = vld [vmem:[#allocation11 + $0x38] sm:$0xff] }
 0x2d9   :  { %256 = vadd.xlane.f32.xlu0 %v255_v21  ;;  %v782_v21 = vpack.c.bf16 %v460_v20, %v459_v19 }
 0x316   :  { %v216_v22 = vpop.xlane.xlu1 %215 }
 0x317   :  { %v218_v23 = vmul.f32 0.03125, %v216_v22 }
 0x319   :  { %v219_v24 = vsub.f32 %v210_v11, %v218_v23  ;;  %v453_v11 = vld [vmem:[#allocation11] sm:$0xff] }
 0x31b   :  { %v220_v25 = vmul.f32 %v219_v24, %v219_v24 }
 0x31d   :  { %v221_v26 = vsel %vm213_vm5, %v220_v25, 0.0 }
 0x31e   :  { %222 = vadd.xlane.f32.xlu0 %v221_v26  ;;  %v655_v26 = vld [vmem:[%s1245_s7 + $0x3] ss:$0 sm:$0xff] }
 0x366   :  { %v257_v39 = vpop.xlane.xlu0 %256 }
 0x367   :  { %v258_v40 = vmul.f32 0.03125, %v257_v39 }
 0x369   :  { %v259_v41 = vadd.f32 1e-05, %v258_v40 }
 0x36b   :  { %805 = vrsqrt.f32 %v259_v41  ;;  %v550_v41 = vld [vmem:[#allocation13 + $0x10] sm:$0xff] }
 0x375   :  { %v806_v42 = vpop.eup %805 }
 0x376   :  { %v261_v44 = vmul.f32 %v806_v42, %v249_v17  ;;  %v458_v17 = vld [vmem:[#allocation11 + $0x28] sm:$0xff]  ;;  %v551_v42 = vld [vmem:[#allocation13 + $0x18] sm:$0xff] }
 0x377   :  { %v779_v18 = vpack.c.bf16 %v458_v17, %v457_v16 }
 0x378   :  { %v262_v46 = vmul.f32 %v651_v43, %v261_v44 }
 0x37a   :  { %v263_v47 = vadd.f32 %v652_v45, %v262_v46  ;;  %v538_v46 = vld [vmem:[#allocation7] sm:$0xff] }
 0x37c   :  { %vm264_vm6 = vcmp.gt.f32.partialorder %v263_v47, 0.0  ;;  %v265_v48 = vmul.f32 0.2, %v263_v47 }
 0x37e   :  { %v266_v49 = vsel %vm264_vm6, %v263_v47, %v265_v48 }
 0x37f   :  { %276 = vrot.lane.b32.xlu1 %v266_v49, %s1012_s27  ;;  %v659_v49 = vld [vmem:[%s1245_s7 + $0x6] ss:$0 sm:$0xff] }
 0x3ab   :  { %v223_v50 = vpop.xlane.xlu0 %222 }
 0x3ac   :  { %v224_v51 = vmul.f32 0.03125, %v223_v50 }
 0x3ae   :  { %v225_v52 = vadd.f32 1e-05, %v224_v51 }
 0x3b0   :  { %807 = vrsqrt.f32 %v225_v52 }
 0x3ba   :  { %v808_v53 = vpop.eup %807 }
 0x3bb   :  { %v227_v54 = vmul.f32 %v808_v53, %v219_v24 }
 0x3bd   :  { %v232_v55 = vmul.f32 %v651_v43, %v227_v54  ;;  %v788_v43 = vpack.c.bf16 %v551_v42, %v550_v41 }
 0x3bf   :  { %v237_v56 = vadd.f32 %v652_v45, %v232_v55 }
 0x3c1   :  { %vm238_vm7 = vcmp.gt.f32.partialorder %v237_v56, 0.0  ;;  %v239_v57 = vmul.f32 0.2, %v237_v56 }
 0x3c3   :  { %v240_v58 = vsel %vm238_vm7, %v237_v56, %v239_v57 }
 0x3c4   :  { %721 = vmatmul.mubr.msk.f32.vlgmr.msra.gmra.mrb[2].mxu0 %vm213_vm5, %v240_v58 }
 0x3c5   :  { %750 = vmatprep.mubr.msk.f32.mxu0 %vm1009_vm0, %v1010_v1  ;;  %786 = vmatpush3.bf16.msra.mxu0 %v785_v35 }
 0x3c6   :  { %787 = vmatprep.subr.bf16.mxu0 %v1008_v0 }
 0x3c9   :  { %789 = vmatpush3.bf16.msra.mxu0 %v788_v43 }
 0x3f1   :  { %v277_v59 = vpop.permute.xlu1 %276 }
 0x3f2   :  { %710 = vmatmul.mubr.msk.f32.vlgmr.msra.gmra.mrb[0].mxu1 %vm213_vm5, %v277_v59 }
 0x3f3   :  { %739 = vmatprep.mubr.msk.f32.mxu1 %vm1009_vm0, %v1010_v1  ;;  %v454_v1 = vld [vmem:[#allocation11 + $0x8] sm:$0xff] }
 0x3f4   :  { %v773_v12 = vpack.c.bf16 %v454_v1, %v453_v11 }
 0x3f6   :  { %774 = vmatpush3.bf16.msra.mxu1 %v773_v12 }
 0x3f7   :  { %775 = vmatprep.subr.bf16.mxu1 %v1008_v0 }
 0x3fa   :  { %777 = vmatpush3.bf16.msra.mxu1 %v776_v15 }
 0x3fb   :  { %778 = vmatprep.subr.bf16.mxu1 %v1008_v0 }
 0x3fe   :  { %780 = vmatpush3.bf16.msra.mxu1 %v779_v18 }
 0x3ff   :  { %781 = vmatprep.subr.bf16.mxu1 %v1008_v0 }
 0x402   :  { %783 = vmatpush3.bf16.msra.mxu1 %v782_v21 }
 0x497   :  { %v419_v60 = vpop.f32.mrb[2].mxu0 }
 0x498   :  { %v722_v61 = vpop.f32.mrb[3].mxu0 }
 0x4c5   :  { %v346_v62 = vpop.f32.mrb[0].mxu1 }
 0x4c6   :  { %v420_v2 = vadd.f32 %v419_v60, %v346_v62  ;;  %v711_v3 = vpop.f32.mrb[1].mxu1 }
 0x4c8   :  { %v424_v4 = vadd.f32 %v423_v63, %v420_v2 }
 0x4ca   :  { %v426_v5 = vsel %vm425_vm8, %v424_v4, 0.0 }
 0x4cb   :  { %427 = vadd.xlane.f32.xlu0 %v426_v5 }
 0x558   :  { %v428_v6 = vpop.xlane.xlu0 %427 }
 0x559   :  { %v430_v7 = vmul.f32 0.015625, %v428_v6 }
 0x55b   :  { %v431_v8 = vsub.f32 %v424_v4, %v430_v7 }
 0x55d   :  { %v432_v9 = vmul.f32 %v431_v8, %v431_v8 }
 0x55f   :  { %v433_v10 = vsel %vm425_vm8, %v432_v9, 0.0 }
 0x560   :  { %434 = vadd.xlane.f32.xlu0 %v433_v10 }
 0x5ed   :  { %v435_v22 = vpop.xlane.xlu0 %434 }
 0x5ee   :  { %v436_v23 = vmul.f32 0.015625, %v435_v22 }
 0x5f0   :  { %v437_v24 = vadd.f32 1e-05, %v436_v23 }
 0x5f2   :  { %809 = vrsqrt.f32 %v437_v24 }
 0x5fc   :  { %v810_v25 = vpop.eup %809 }
 0x5fd   :  { %v439_v27 = vmul.f32 %v810_v25, %v431_v8 }
 0x5ff   :  { %v444_v29 = vmul.f32 %v655_v26, %v439_v27 }
 0x601   :  { %v449_v30 = vadd.f32 %v656_v28, %v444_v29 }
 0x603   :  { %vm450_vm9 = vcmp.gt.f32.partialorder %v449_v30, 0.0  ;;  %v451_v31 = vmul.f32 0.2, %v449_v30 }
 0x605   :  { %v452_v32 = vsel %vm450_vm9, %v449_v30, %v451_v31 }
 0x606   :  { %740 = vmatmul.mubr.msk.f32.vlgmr.msra.gmra.mrb[2].mxu1 %vm425_vm8, %v452_v32 }
 0x6d9   :  { %v534_v37 = vpop.f32.mrb[2].mxu1 }
 0x6da   :  { %v535_v38 = vadd.f32 %v657_v36, %v534_v37  ;;  %v741_v39 = vpop.f32.mrb[3].mxu1 }
 0x6dc   :  { %v539_v40 = vmul.f32 0.5, %v535_v38 }
 0x6de   :  { %v540_v44 = vmul.f32 1.442695, %v539_v40 }
 0x6e0   :  { %811 = vpow2.f32 %v540_v44 }
 0x6ea   :  { %v812_v45 = vpop.eup %811 }
 0x6eb   :  { %543 = vrot.lane.b32.xlu0 %v812_v45, %s1012_s27 }
 0x75d   :  { %v544_v47 = vpop.permute.xlu0 %543 }
 0x75e   :  { %v546_v0 = vmul.f32 %v544_v47, %v538_v46 }
 0x760   :  { %v547_v48 = vadd.f32 %v546_v0, %v535_v38 }
 0x762   :  { %751 = vmatmul.mubr.msk.f32.vlgmr.msra.gmra.mrb[4].mxu0 %vm213_vm5, %v547_v48 }
 0x835   :  { %v625_v50 = vpop.f32.mrb[4].mxu0 }
 0x836   :  { %v626_v51 = vadd.f32 %v659_v49, %v625_v50  ;;  %v752_v52 = vpop.f32.mrb[5].mxu0 }
 0x838   :  { %629 = vst [vmem:[#allocation14] sm:$0xff] %v626_v51 }
 0x839   :  { %978 = shalt.err (!%p975_p4)
}
 0x83a   :  { %s979_s13 = scalar_lea.hbm %s1246_s8, 128 }
 0x83b   :  { %p980_p5 = scmp.ne.s32.totalorder %s1246_s8, %s979_s13  ;;  %p983_p6 = scmp.lt.u32.totalorder %s979_s13, %s1246_s8 }
 0x83d   :  { %p985_p7 = pnand %p983_p6, %p980_p5 }
 0x83f   :  { %988 = shalt.err (!%p985_p7)
}
 0x840   :  { %639 = dma.vmem_to_hbm [thread:$0]  %s637_s5, 128, %s1246_s8, [#allocation4]  }
 0x841   :  { %997 = dma.done.wait [#allocation4], 128  }
 0x842   :  { %998 = vsyncadd [#allocation4], 4294967168 }
 0x843   :  { %643 = vsyncpa [#allocation3], 1 }
 0x844   :  { %644 = vsyncpa [#allocation6], 1 }
 0x845   :  { %645 = vsyncpa [#allocation9], 1 }
 0x846   :  { %646 = vsyncpa [#allocation12], 1 }
 0x847   :  { %647 = vsyncpa [#allocation4], 1 }

</bundles_post_ra>
